<compile_context>
chip_gen: v7x
topology: tpu7x:2x2x1
jax: 0.10.0
libtpu: 0.0.40
codegen_flags: <defaults>
</compile_context>

<pallas_src>
import math

import jax
import jax.numpy as jnp
from jax import lax
from jax.experimental import pallas as pl
from jax.experimental.pallas import tpu as pltpu


def _projection_kernel(x_ref, w_ref, b_ref, o_ref):
    # x_ref: (F, TILE_T)   w_ref: (F, E)   b_ref: (1, E)   o_ref: (TILE_T, E)
    # out[t, e] = sum_f x[f, t] * w[f, e]  -- the permute(0,2,1) is fused here
    # by contracting the sublane (F) axis of the activation tile.
    acc = lax.dot_general(
        x_ref[...],
        w_ref[...],
        dimension_numbers=(((0,), (0,)), ((), ())),
        preferred_element_type=jnp.float32,
    )  # (TILE_T, E), f32
    o_ref[...] = (acc + b_ref[...]).astype(o_ref.dtype)


def patch_frequency_embedding(x, weight, bias, *, tile_t=2048):
    """
    x:      (B, 1, F, T)  float32
    weight: (E, F)        float32   (PyTorch nn.Linear weight layout)
    bias:   (E,)          float32
    returns (B, T, E)     float32
    """
    B, C, F, T = x.shape
    assert C == 1, "PatchFrequencyEmbedding expects a size-1 channel dim"
    E = weight.shape[0]
    assert weight.shape == (E, F)
    assert bias.shape == (E,)

    # Tiny one-time glue on the params (negligible: E*F elements).
    w_t = weight.T               # (F, E)
    b2d = bias.reshape(1, E)     # (1, E)

    # Tile the time axis. If T fits in one tile, use the full dim (always a
    # legal block shape); otherwise use a multiple-of-128 tile so boundary
    # blocks stay legal (Pallas masks the out-of-range rows).
    if T <= tile_t:
        TILE_T = T
    else:
        TILE_T = max(128, (tile_t // 128) * 128)
    grid = (B, pl.cdiv(T, TILE_T))

    out = pl.pallas_call(
        _projection_kernel,
        out_shape=jax.ShapeDtypeStruct((B, T, E), x.dtype),
        grid_spec=pltpu.PrefetchScalarGridSpec(
            num_scalar_prefetch=0,
            grid=grid,
            in_specs=[
                # (B, 1, F, T): squeeze batch + channel dims, tile T.
                pl.BlockSpec((None, None, F, TILE_T), lambda b, t: (b, 0, 0, t)),
                # Weight / bias are small and resident across the whole grid.
                pl.BlockSpec((F, E), lambda b, t: (0, 0)),
                pl.BlockSpec((1, E), lambda b, t: (0, 0)),
            ],
            # (B, T, E): squeeze batch dim, tile T; E stays lane-dense.
            out_specs=pl.BlockSpec((None, TILE_T, E), lambda b, t: (b, t, 0)),
        ),
        compiler_params=pltpu.CompilerParams(
            dimension_semantics=("parallel", "parallel"),
        ),
        cost_estimate=pl.CostEstimate(
            flops=2 * B * T * F * E,
            transcendentals=0,
            bytes_accessed=4 * (B * F * T + F * E + E + B * T * E),
        ),
    )(x, w_t, b2d)

    return out


def _reference(x, weight, bias):
    # Pure-JAX reference matching the PyTorch module.
    return jnp.einsum("bft,ef->bte", x[:, 0], weight) + bias


if __name__ == "__main__":
    key = jax.random.PRNGKey(0)

    # Small configs consistent with the module's forward: (batch, 1, freq, time).
    configs = [
        dict(B=2, F=16, T=8, E=32),    # batch=2, channels=1, freq=16, time=8
        dict(B=3, F=24, T=40, E=48),   # non-power-of-two sanity check
    ]

    for cfg in configs:
        B, F, T, E = cfg["B"], cfg["F"], cfg["T"], cfg["E"]
        key, kx, kw, kb = jax.random.split(key, 4)

        x = jax.random.normal(kx, (B, 1, F, T), dtype=jnp.float32)

        # Deterministic nn.Linear-style init: U(-1/sqrt(F), 1/sqrt(F)).
        bound = 1.0 / math.sqrt(F)
        weight = jax.random.uniform(kw, (E, F), minval=-bound, maxval=bound,
                                    dtype=jnp.float32)
        bias = jax.random.uniform(kb, (E,), minval=-bound, maxval=bound,
                                  dtype=jnp.float32)

        out = patch_frequency_embedding(x, weight, bias)
        out = jax.block_until_ready(out)

        ref = _reference(x, weight, bias)
        assert out.shape == (B, T, E)
        assert jnp.allclose(out, ref, atol=1e-5, rtol=1e-5)

    print("KERNEL_OK")
</pallas_src>

<mosaic_0001>
module attributes {stable_mosaic.version = 11 : i64} {
  func.func @_projection_kernel(%arg0: i32, %arg1: i32, %arg2: memref<1x1x16x8xf32, #tpu.memory_space<vmem>>, %arg3: memref<16x32xf32, #tpu.memory_space<vmem>>, %arg4: memref<1x32xf32, #tpu.memory_space<vmem>>, %arg5: memref<1x8x32xf32, #tpu.memory_space<vmem>>) attributes {dimension_semantics = [#tpu.dimension_semantics<parallel>, #tpu.dimension_semantics<parallel>], iteration_bounds = array<i64: 2, 1>, scalar_prefetch = 0 : i64, scratch_operands = 0 : i64, tpu.core_type = #tpu.core_type<tc>, window_params = [{transform_indices = @transform_0, window_bounds = array<i64: 1, 1, 16, 8>}, {pipeline_mode = #tpu.pipeline_mode<synchronous>, transform_indices = @transform_1, window_bounds = array<i64: 16, 32>}, {pipeline_mode = #tpu.pipeline_mode<synchronous>, transform_indices = @transform_2, window_bounds = array<i64: 1, 32>}, {transform_indices = @transform_3, window_bounds = array<i64: 1, 8, 32>}]} {
    %c0 = arith.constant 0 : index
    %c0_0 = arith.constant 0 : index
    %c0_1 = arith.constant 0 : index
    %c0_2 = arith.constant 0 : index
    %0 = vector.load %arg2[%c0, %c0_0, %c0_1, %c0_2] : memref<1x1x16x8xf32, #tpu.memory_space<vmem>>, vector<1x1x16x8xf32>
    %1 = vector.shape_cast %0 : vector<1x1x16x8xf32> to vector<16x8xf32>
    %c0_3 = arith.constant 0 : index
    %c0_4 = arith.constant 0 : index
    %2 = vector.load %arg3[%c0_3, %c0_4] : memref<16x32xf32, #tpu.memory_space<vmem>>, vector<16x32xf32>
    %cst = arith.constant dense<0.000000e+00> : vector<8x32xf32>
    %3 = tpu.matmul %1, %2, %cst {dimension_numbers = #tpu.dot_dimension_numbers<[0], [0], [1], [1], [0, 1, 1, 1], [], []>} : vector<16x8xf32>, vector<16x32xf32>, vector<8x32xf32> -> vector<8x32xf32>
    %c0_5 = arith.constant 0 : index
    %c0_6 = arith.constant 0 : index
    %4 = vector.load %arg4[%c0_5, %c0_6] : memref<1x32xf32, #tpu.memory_space<vmem>>, vector<1x32xf32>
    %5 = vector.broadcast %4 : vector<1x32xf32> to vector<8x32xf32>
    %6 = arith.addf %3, %5 : vector<8x32xf32>
    %c0_7 = arith.constant 0 : index
    %c0_8 = arith.constant 0 : index
    %c0_9 = arith.constant 0 : index
    %7 = vector.load %arg5[%c0_7, %c0_8, %c0_9] : memref<1x8x32xf32, #tpu.memory_space<vmem>>, vector<1x8x32xf32>
    %8 = vector.shape_cast %7 : vector<1x8x32xf32> to vector<8x32xf32>
    %9 = vector.shape_cast %6 : vector<8x32xf32> to vector<1x8x32xf32>
    tpu.vector_store %arg5[%c0_7, %c0_8, %c0_9], %9 {strides = array<i32>} : memref<1x8x32xf32, #tpu.memory_space<vmem>>, vector<1x8x32xf32>,
    return
  }
  func.func @transform_0(%arg0: i32, %arg1: i32) -> (i32, i32, i32, i32) {
    %c0_i32 = arith.constant 0 : i32
    %c0_i32_0 = arith.constant 0 : i32
    %c0_i32_1 = arith.constant 0 : i32
    return %arg0, %c0_i32, %c0_i32_0, %arg1 : i32, i32, i32, i32
  }
  func.func @transform_1(%arg0: i32, %arg1: i32) -> (i32, i32) {
    %c0_i32 = arith.constant 0 : i32
    %c0_i32_0 = arith.constant 0 : i32
    %c0_i32_1 = arith.constant 0 : i32
    return %c0_i32, %c0_i32_0 : i32, i32
  }
  func.func @transform_2(%arg0: i32, %arg1: i32) -> (i32, i32) {
    %c0_i32 = arith.constant 0 : i32
    %c0_i32_0 = arith.constant 0 : i32
    %c0_i32_1 = arith.constant 0 : i32
    return %c0_i32, %c0_i32_0 : i32, i32
  }
  func.func @transform_3(%arg0: i32, %arg1: i32) -> (i32, i32, i32) {
    %c0_i32 = arith.constant 0 : i32
    %c0_i32_0 = arith.constant 0 : i32
    return %arg0, %arg1, %c0_i32 : i32, i32, i32
  }
}

</mosaic_0001>

<bundles_post_ra>
// kernel: tpu_custom_call.1
= control target key start
LH: loop header
LB: loop body
LE: loop exit
PB: predicated region body
PF: predicated region fallthrough
CT: control target
= control target key end

     0   :  { %8 = vsyncpa [#allocation3], 0  ;;  %s713_s0 = inlined_call_operand.vmem [shape: f32[2,1,16,8], index: 0, kind: input, shape index: {}]   ;;  %s714_s1 = inlined_call_operand.vmem [shape: f32[16,32], index: 1, kind: input, shape index: {}]   ;;  %s715_s2 = inlined_call_operand.vmem [shape: f32[1,32], index: 2, kind: input, shape index: {}]   ;;  %s716_s3 = inlined_call_operand.hbm [shape: f32[2,8,32], index: 3, kind: output, shape index: {}]  }
   0x1   :  { %10 = vsyncpa [#allocation3 + $0x1], 0  ;;  %s592_s12 = smov 0   ;;  %s594_s13 = smov 0  }
   0x2   :  { %s596_s14 = smov 0   ;;  %s598_s15 = smov 0  }
   0x3   :  { %s600_s16 = smov 0   ;;  %s602_s17 = smov 0  }
   0x4 LB: > { %s402_s18 = sadd.s32 4294967295, %s566_s17   ;;  %s403_s19 = sadd.s32 4294967294, %s566_s17   ;;  %s566_s17 = sphi %s602_s17, %s16_s17   ;;  %s562_s16 = sphi %s600_s16, %s723_s16   ;;  %s558_s15 = sphi %s598_s15, %s722_s15   ;;  %s554_s14 = sphi %s596_s14, %s721_s14   ;;  %s550_s13 = sphi %s594_s13, %s720_s13   ;;  %s546_s12 = sphi %s592_s12, %s719_s12  }
   0x5   : > { %s28_s20 = sadd.s32 1, %s562_s16  ;;  %s107_s21 = sadd.s32 1, %s554_s14 }
   0x6   : > { %p30_p0 = scmp.ge.s32.totalorder %s28_s20, 2  ;;  %p117_p1 = scmp.ne.s32.totalorder %s554_s14, %s550_s13 }
   0x7   : > { %p118_p2 = scmp.eq.s32.totalorder %s402_s18, 1  ;;  %p123_p3 = scmp.ne.s32.totalorder %s550_s13, %s546_s12 }
   0x8   : > { %s725_s20 = smov (%p30_p0, %s28_s20), 0  ;;  %p124_p5 = scmp.eq.s32.totalorder %s403_s19, 1 }
   0x9   : > { %p632_p4 = por %p118_p2, %p117_p1  ;;  %s102_s23 = ssub.s32 %s562_s16, %s725_s20 }
   0xa   : > { %p406_p6 = scmp.ge.s32.totalorder %s566_s17, 1  ;;  %p105_p7 = scmp.eq.s32.totalorder %s102_s23, 0 }
   0xb   : > { %p639_p8 = por %p124_p5, %p123_p3  ;;  %p159_p9 = scmp.lt.s32.totalorder %s566_s17, 3 }
   0xc   : > { %s645_s25 = scalar_select %p105_p7, %s554_s14, %s107_s21  }
   0xd   : > { %p160_p10 = pnand %p406_p6, %p159_p9 }
   0xe   : > { %p186_p11 = scmp.lt.s32.totalorder (!%p160_p10), %s558_s15, 1  ;;  %v196_v0 = vld [vmem:[%s714_s1] sm:$0xff] (!%p160_p10)  ;;  %v197_v1 = vld [vmem:[%s714_s1 + $0x8] sm:$0xff] (!%p160_p10)  ;;  %v568_v2 = vmov (!%p160_p10), 0.0|0.0   ;;  %vm569_vm0 = vmmov (!%p160_p10), 0   ;;  %v570_v4 = vmov (!%p160_p10), 0.0  }
   0xf   : > { %163 = sbr.rel (%p160_p10) target bundleno = 384 (0x180), region = 32  ;;  %427 = vmatprep.subr.bf16.mxu0 (!%p160_p10), %v568_v2  ;;  %v428_v3 = vpack.c.bf16 (!%p160_p10), %v197_v1, %v196_v0  ;;  %424 = vmatprep.mubr.msk.f32.mxu0 (!%p160_p10), %vm569_vm0, %v570_v4  ;;  %vm237_vm1 = vcmask (!%p160_p10), 130048   ;;  %s183_s8 = sand.u32 (!%p160_p10), 1, %s550_s13   ;;  %v410_v8 = vld [vmem:[%s715_s2] ss:$0 sm:$0xff] (!%p160_p10)  ;;  %vm311_vm2 = vcmask (!%p160_p10), 261120  }
  0x10   : > { %s407_s9 = sshll.u32 (!%p160_p10), %s183_s8, 3  ;;  %s413_s18 = sshll.u32 (!%p160_p10), %s558_s15, 7 }
  0x11   : > { %429 = vmatpush3.bf16.msra.mxu0 (!%p160_p10), %v428_v3  ;;  %s185_s19 = scalar_lea.vmem (!%p160_p10), [#allocation2], %s407_s9  ;;  %s666_s27 = scalar_lea.hbm (!%p160_p10), %s716_s3, %s413_s18 }
  0x12   : > { %s328_s21 = sshll.u32 (!%p160_p10), %s185_s19, 4  ;;  %s314_s28 = scalar_lea.sflag (!%p160_p10), [#allocation3], %s183_s8  ;;  %s668_s21 = int_to_ptr.vmem [resolvable:$true] %s328_s21 }
  0x13   : > { %s488_s29 = scalar_lea.vmem (!%p160_p10), %s668_s21, 128 }
  0x14   : > { %p489_p12 = scmp.ne.s32.totalorder (!%p160_p10), %s668_s21, %s488_s29 }
  0x16   : > { %s187_s30 = scalar_select %p186_p11, %s558_s15, 1 }
  0x17   : > { %p490_p13 = pnand %p489_p12, %p632_p4  ;;  %s571_s15 = smov [#allocation2]  }
  0x18   : > { %s416_s4 = sshll.u32 %s187_s30, 4  ;;  %s492_s30 = sshll.u32 %s571_s15, 4  ;;  %s493_s30 = int_to_ptr.vmem [resolvable:$false] %s492_s30 }
  0x19   : > { %s193_s7 = scalar_lea.vmem %s713_s0, %s416_s4  ;;  %p491_p0 = pneg %p490_p13 }
  0x1a   : > { %v194_v5 = vld [vmem:[%s193_s7] sm:$0xff]  ;;  %v195_v6 = vld [vmem:[%s193_s7 + $0x8] sm:$0xff]  ;;  %s494_s4 = scalar_lea.vmem %s493_s30, 256  ;;  %p495_p1 = scmp.lt.s32.totalorder %s668_s21, %s493_s30 }
  0x1b   : > { %205 = vxpose.xlu0.b32.start [1/2] (short) (narrow) %v194_v5, 8  ;;  %p496_p2 = scmp.lt.s32.totalorder %s494_s4, %s488_s29 }
  0x1d   : > { %p497_p3 = por %p496_p2, %p495_p1 }
  0x1f   : > { %206 = vxpose.xlu0.b32.end [2/2] (short) (narrow) %v195_v6, 8  ;;  %p498_p5 = pnand %p497_p3, %p491_p0 }
  0x9b   : > { %v221_v7 = vpop.trf.xlu0 }
  0x9c   : > { %425 = vmatmul.mubr.msk.f32.vlgmr.msra.gmra.mrb[0].mxu0 %vm237_vm1, %v221_v7 }
 0x16f   : > { %v307_v9 = vpop.f32.mrb[0].mxu0 }
 0x170   : > { %v308_v10 = vadd.f32 %v410_v8, %v307_v9  ;;  %v426_v11 = vpop.f32.mrb[1].mxu0 }
 0x172   : > { %312 = vst.msk [vmem:[%s185_s19] sm:$0xff] %vm311_vm2, %v308_v10 }
 0x173   : > { %501 = shalt.err (!%p498_p5)
}
 0x174   : > { %s502_s5 = scalar_lea.hbm %s666_s27, 128  ;;  %s506_s8 = scalar_lea.hbm %s716_s3, 256 }
 0x175   : > { %p503_p6 = scmp.ne.s32.totalorder %s666_s27, %s502_s5  ;;  %p507_p10 = scmp.lt.u32.totalorder %s666_s27, %s716_s3 }
 0x176   : > { %p508_p11 = scmp.lt.u32.totalorder %s506_s8, %s502_s5  ;;  %p510_p13 = scmp.lt.u32.totalorder %s502_s5, %s666_s27 }
 0x177   : > { %p504_p7 = pnand %p503_p6, %p632_p4 }
 0x178   : > { %p509_p12 = por %p508_p11, %p507_p10 }
 0x179   : > { %p505_p9 = pneg %p504_p7 }
 0x17a   : > { %p511_p0 = por %p510_p13, %p509_p12 }
 0x17c   : > { %p512_p1 = pnand %p511_p0, %p505_p9 }
 0x17e   : > { %515 = shalt.err (!%p512_p1)
}
 0x17f   : > { %430 = dma.vmem_to_hbm [thread:$0]  (%p632_p4), %s668_s21, 128, %s666_s27, %s314_s28  }
 0x180 PF: > { %p436_p2 = scmp.ge.s32.totalorder %s566_s17, 2  ;;  %s340_s11 = sand.u32 1, %s546_s12  }
 0x181   : > { %s341_s18 = scalar_lea.sflag [#allocation3], %s340_s11 }
 0x182   : > { %p433_p3 = pnand %p436_p2, %p639_p8 }
 0x184   : > { %541 = dma.done.wait (!%p433_p3), %s341_s18, 128  }
 0x185   : > { %543 = vsyncadd (!%p433_p3), %s341_s18, 4294967168  ;;  %s16_s17 = sadd.s32 1, %s566_s17   ;;  %s719_s12 = smov %s550_s13 }
 0x186   : > { %p13_p5 = scmp.ge.s32.totalorder %s16_s17, 4   ;;  %s720_s13 = smov %s554_s14 }
 0x187   : > { %s721_s14 = smov %s645_s25  ;;  %s722_s15 = smov %s562_s16 }
 0x188   : > { %s723_s16 = smov %s725_s20  ;;  %15 = sbr.rel (!%p13_p5) target bundleno = 4 (0x4), region = 67 }
 0x18f   :  { %346 = vsyncpa [#allocation3], 1 }
 0x190   :  { %348 = vsyncpa [#allocation3 + $0x1], 1 }

</bundles_post_ra>
